<compile_context>
chip_gen: v7x
topology: tpu7x:2x2x1
jax: 0.10.0
libtpu: 0.0.40
codegen_flags: <defaults>
</compile_context>

<pallas_src>
import functools

import jax
import jax.numpy as jnp
from jax import lax
from jax.experimental import pallas as pl
from jax.experimental.pallas import tpu as pltpu

_LANES = 128
_SUBLANES = 8


def _round_up(n, m):
    return ((n + m - 1) // m) * m


def _cdiv(a, b):
    return -(-a // b)


def _gelu(x, *, approximate):
    if approximate:
        # tanh formulation: the transcendental runs on the EUP (bf16 on v6e/v7x).
        return 0.5 * x * (1.0 + jnp.tanh(0.7978845608028654 * (x + 0.044715 * (x * x * x))))
    # Exact (erf) GELU — torch.nn.GELU() default.  erf is kept in f32: exactness is
    # part of the module contract and Mosaic's erf lowering is 32-bit.
    xf = x.astype(jnp.float32)
    return 0.5 * xf * (1.0 + lax.erf(xf * 0.7071067811865476))


def mlp_kernel(x_ref, w1_ref, b1_ref, w2_ref, b2_ref, w3_ref, b3_ref, o_ref,
               *, skinny_input: bool, approximate_gelu: bool, act_dtype):
    """One batch tile, feature-major: activations are [features, batch_tile]."""
    mxu = jnp.bfloat16

    def act(h):
        if approximate_gelu:
            return _gelu(h.astype(act_dtype), approximate=True).astype(mxu)
        return _gelu(h, approximate=False).astype(mxu)

    # ---- Layer 1: h1 = W1 @ x^T + b1 ----------------------------------------
    if skinny_input:
        # Din tiny (e.g. 2): an MXU pass would be >98% padding; VPU broadcast FMAs.
        tm = x_ref.shape[1]
        h1 = jnp.zeros((w1_ref.shape[0], tm), jnp.float32)
        for d in range(x_ref.shape[0]):                 # static, tiny trip count
            h1 = h1 + w1_ref[:, d:d + 1] * x_ref[d:d + 1, :].astype(jnp.float32)
        h1 = h1 + b1_ref[...]
    else:
        # bf16 operands (cast once in the wrapper) on the MXU, f32 accumulation.
        h1 = jnp.dot(w1_ref[...], x_ref[...],
                     preferred_element_type=jnp.float32) + b1_ref[...]
    a1 = act(h1)

    # ---- Layer 2 --------------------------------------------------------------
    h2 = jnp.dot(w2_ref[...], a1, preferred_element_type=jnp.float32) + b2_ref[...]
    a2 = act(h2)

    # ---- Layer 3: output rows padded only to a sublane multiple; batch is lane-dense
    y = jnp.dot(w3_ref[...], a2, preferred_element_type=jnp.float32) + b3_ref[...]
    o_ref[...] = y.astype(o_ref.dtype)


def mlps_forward(x, params, *, approximate_gelu=False):
    """Fused MLP forward.  x: [batch, input_dim].

    params use the PyTorch nn.Linear layout: w* is (out_features, in_features),
    b* is (out_features,).
    """
    w1, b1 = params["w1"], params["b1"]
    w2, b2 = params["w2"], params["b2"]
    w3, b3 = params["w3"], params["b3"]

    B, Din = x.shape
    H1, H2, Dout = w1.shape[0], w2.shape[0], w3.shape[0]

    # ---- per-generation knobs --------------------------------------------------
    kind = jax.devices()[0].device_kind.lower()
    is_v7 = "v7" in kind
    has_bf16_vpu = is_v7 or ("v6" in kind)
    vmem_cap = (64 << 20) if is_v7 else (128 << 20)   # physical VMEM per TensorCore
    tm_cap = 512 if has_bf16_vpu else 256             # v5e: keep f32 intermediates small (1 vst slot)
    min_steps = 2 if is_v7 else 1                     # v7x: 2 TensorCores want >= 2 grid steps

    # ---- batch tiling: batch lives on the lane axis -> tiles are multiples of 128 ----
    steps = max(min_steps, _cdiv(B, tm_cap))
    if min_steps > 1 and steps % 2:
        steps += 1                                     # even split across the 2 cores
    tm = _round_up(_cdiv(B, steps), _LANES)
    Bp = tm * steps

    Dt = _round_up(Dout, _SUBLANES)                    # output rows (sublane axis) padding only

    # ---- dtype plumbing ---------------------------------------------------------
    skinny = Din <= 8
    x_dtype = jnp.float32 if skinny else jnp.bfloat16  # wrapper-side bf16 cast halves x DMA
    xt = jnp.pad(x, ((0, Bp - B), (0, 0))).T.astype(x_dtype)           # (Din, Bp)

    w1_c = w1.astype(jnp.float32 if skinny else jnp.bfloat16)          # (H1, Din)
    b1_c = b1.reshape(H1, 1).astype(jnp.float32)
    w2_c = w2.astype(jnp.bfloat16)                                     # (H2, H1)
    b2_c = b2.reshape(H2, 1).astype(jnp.float32)
    w3_c = jnp.pad(w3, ((0, Dt - Dout), (0, 0))).astype(jnp.bfloat16)  # (Dt, H2)
    b3_c = jnp.pad(b3, (0, Dt - Dout)).reshape(Dt, 1).astype(jnp.float32)
    # TODO(synk): on v7x, fp8 W2/W3 (scales folded into the bias path) would halve the
    # resident weight footprint and DMA; needs accuracy validation.

    act_dtype = jnp.bfloat16 if has_bf16_vpu else jnp.float32
    kernel = functools.partial(mlp_kernel, skinny_input=skinny,
                               approximate_gelu=approximate_gelu, act_dtype=act_dtype)

    # ---- VMEM budget & weight buffering (static decision, no try/except) --------
    weight_bytes = sum(int(a.size) * a.dtype.itemsize
                       for a in (w1_c, b1_c, w2_c, b2_c, w3_c, b3_c))
    single_buffer_weights = 2 * weight_bytes > vmem_cap // 2
    weight_buf = 1 if single_buffer_weights else 2

    x_tile_bytes = Din * tm * xt.dtype.itemsize
    out_tile_bytes = Dt * tm * x.dtype.itemsize
    act_bytes = tm * (H1 + H2) * 4                     # in-flight f32 intermediates (upper bound)
    need = (weight_buf * weight_bytes + 2 * (x_tile_bytes + out_tile_bytes)
            + 2 * act_bytes + (4 << 20))
    vmem_limit = int(min(vmem_cap - (8 << 20), max(32 << 20, need)))
    # TODO(synk): if `need` still exceeds the cap (hidden sizes >> 4096 on v7x), add a
    # grid axis over H1 (K-tiling of layer 2 with a VMEM accumulator, streaming W2 in
    # (tk, H2) slabs) instead of keeping W2 fully resident.

    flops = 2 * Bp * (Din * H1 + H1 * H2 + H2 * Dt)
    transcendentals = Bp * (H1 + H2)                   # one erf/tanh per hidden element
    bytes_accessed = (int(xt.size) * xt.dtype.itemsize + weight_bytes
                      + Bp * Dt * x.dtype.itemsize)
    cost = pl.CostEstimate(flops=flops, transcendentals=transcendentals,
                           bytes_accessed=bytes_accessed)

    def const_spec(shape):
        # Grid-invariant weights/biases: DMA'd once (constant index_map); single-buffer
        # them only when the footprint matters (mostly v7x with 4096-wide hidden layers).
        if single_buffer_weights:
            return pl.BlockSpec(shape, lambda i: (0, 0), pipeline_mode=pl.Buffered(1))
        return pl.BlockSpec(shape, lambda i: (0, 0))

    out_t = pl.pallas_call(
        kernel,
        out_shape=jax.ShapeDtypeStruct((Dt, Bp), x.dtype),
        grid_spec=pltpu.PrefetchScalarGridSpec(
            num_scalar_prefetch=0,
            grid=(steps,),
            in_specs=[
                pl.BlockSpec((Din, tm), lambda i: (0, i)),   # x^T tile (batch on lanes)
                const_spec((H1, Din)),                       # W1 (resident)
                const_spec((H1, 1)),                         # b1
                const_spec((H2, H1)),                        # W2
                const_spec((H2, 1)),                         # b2
                const_spec((Dt, H2)),                        # W3 (rows padded to 8)
                const_spec((Dt, 1)),                         # b3
            ],
            out_specs=pl.BlockSpec((Dt, tm), lambda i: (0, i)),  # lane-dense output slab
        ),
        compiler_params=pltpu.CompilerParams(
            dimension_semantics=("parallel",),
            vmem_limit_bytes=vmem_limit),
        cost_estimate=cost,
    )(xt, w1_c, b1_c, w2_c, b2_c, w3_c, b3_c)

    return out_t.T[:B, :Dout]


def init_params(key, input_dim, units, output_dim, dtype=jnp.float32):
    """PyTorch nn.Linear layout/init: w (out, in), b (out,), uniform(+-1/sqrt(fan_in))."""
    dims = [input_dim] + list(units) + [output_dim]
    names = [("w1", "b1"), ("w2", "b2"), ("w3", "b3")]
    params = {}
    for idx, (din, dout) in enumerate(zip(dims[:-1], dims[1:])):
        key, kw, kb = jax.random.split(key, 3)
        bound = float(1.0 / (din ** 0.5))
        wn, bn = names[idx]
        params[wn] = jax.random.uniform(kw, (dout, din), dtype, -bound, bound)
        params[bn] = jax.random.uniform(kb, (dout,), dtype, -bound, bound)
    return params


def reference_forward(x, params, *, mimic_kernel_precision=False,
                      approximate_gelu=False, act_dtype=jnp.float32):
    """Pure-JAX reference (torch layout: y = x @ W.T + b).  With
    mimic_kernel_precision=True it mirrors the kernel's bf16-MXU / f32-accumulate
    precision choices for a tight comparison."""
    w1, b1 = params["w1"], params["b1"]
    w2, b2 = params["w2"], params["b2"]
    w3, b3 = params["w3"], params["b3"]
    skinny = x.shape[1] <= 8

    def dot_t(a, w):
        if mimic_kernel_precision:
            return jnp.dot(a.astype(jnp.bfloat16), w.T.astype(jnp.bfloat16),
                           preferred_element_type=jnp.float32)
        return jnp.dot(a, w.T, precision=lax.Precision.HIGHEST)

    def act(h):
        if approximate_gelu:
            if mimic_kernel_precision:
                h = h.astype(act_dtype)
            return _gelu(h, approximate=True).astype(jnp.float32)
        return _gelu(h, approximate=False)

    if mimic_kernel_precision and skinny:
        h = jnp.dot(x, w1.T, precision=lax.Precision.HIGHEST) + b1   # kernel VPU path is f32
    else:
        h = dot_t(x, w1) + b1
    h = act(h)
    h = dot_t(h, w2) + b2
    h = act(h)
    return dot_t(h, w3) + b3


if __name__ == "__main__":
    # Small shapes consistent with MLPs(input_dim=2, output_dim=1, units=[...]):
    # batch=16, input_dim=2, hidden units=[128, 128], output_dim=1.
    # (On v6e/v7x, hidden sizes that are multiples of 256 would fill the 256x256 MXU
    #  better; 128 is kept here to stay small and matches v5e's 128x128 MXU.)
    batch, input_dim, units, output_dim = 16, 2, [128, 128], 1

    key = jax.random.PRNGKey(0)
    key, kx = jax.random.split(key)
    x = jax.random.normal(kx, (batch, input_dim), jnp.float32)
    params = init_params(key, input_dim, units, output_dim)

    out = jax.block_until_ready(mlps_forward(x, params))
    assert out.shape == (batch, output_dim)

    # Tight check against a reference that mirrors the kernel's precision choices.
    ref_q = reference_forward(x, params, mimic_kernel_precision=True)
    assert jnp.allclose(out, ref_q, atol=5e-3, rtol=5e-3), "mismatch vs precision-matched reference"

    # Loose check against the pure-f32 reference (bf16 MXU operands relax tolerance).
    ref = reference_forward(x, params)
    assert jnp.allclose(out, ref, atol=8e-2, rtol=8e-2), "mismatch vs f32 reference"

    print("KERNEL_OK")
</pallas_src>

<mosaic_0001>
module attributes {stable_mosaic.version = 11 : i64} {
  func.func @mlp_kernel(%arg0: i32, %arg1: memref<2x128xf32, #tpu.memory_space<vmem>>, %arg2: memref<128x2xf32, #tpu.memory_space<vmem>>, %arg3: memref<128x1xf32, #tpu.memory_space<vmem>>, %arg4: memref<128x128xbf16, #tpu.memory_space<vmem>>, %arg5: memref<128x1xf32, #tpu.memory_space<vmem>>, %arg6: memref<8x128xbf16, #tpu.memory_space<vmem>>, %arg7: memref<8x1xf32, #tpu.memory_space<vmem>>, %arg8: memref<8x128xf32, #tpu.memory_space<vmem>>) attributes {dimension_semantics = [#tpu.dimension_semantics<parallel>], iteration_bounds = array<i64: 1>, scalar_prefetch = 0 : i64, scratch_operands = 0 : i64, tpu.core_type = #tpu.core_type<tc>, window_params = [{transform_indices = @transform_0, window_bounds = array<i64: 2, 128>}, {pipeline_mode = #tpu.pipeline_mode<synchronous>, transform_indices = @transform_1, window_bounds = array<i64: 128, 2>}, {pipeline_mode = #tpu.pipeline_mode<synchronous>, transform_indices = @transform_2, window_bounds = array<i64: 128, 1>}, {pipeline_mode = #tpu.pipeline_mode<synchronous>, transform_indices = @transform_3, window_bounds = array<i64: 128, 128>}, {pipeline_mode = #tpu.pipeline_mode<synchronous>, transform_indices = @transform_4, window_bounds = array<i64: 128, 1>}, {pipeline_mode = #tpu.pipeline_mode<synchronous>, transform_indices = @transform_5, window_bounds = array<i64: 8, 128>}, {pipeline_mode = #tpu.pipeline_mode<synchronous>, transform_indices = @transform_6, window_bounds = array<i64: 8, 1>}, {transform_indices = @transform_7, window_bounds = array<i64: 8, 128>}]} {
    %cst = arith.constant 0.000000e+00 : f32
    %0 = vector.broadcast %cst : f32 to vector<128x128xf32>
    %c0 = arith.constant 0 : index
    %c0_0 = arith.constant 0 : index
    %1 = vector.load %arg2[%c0, %c0_0] : memref<128x2xf32, #tpu.memory_space<vmem>>, vector<128x1xf32>
    %c0_1 = arith.constant 0 : index
    %c0_2 = arith.constant 0 : index
    %2 = vector.load %arg1[%c0_1, %c0_2] : memref<2x128xf32, #tpu.memory_space<vmem>>, vector<1x128xf32>
    %3 = vector.broadcast %1 : vector<128x1xf32> to vector<128x128xf32>
    %4 = vector.broadcast %2 : vector<1x128xf32> to vector<128x128xf32>
    %5 = arith.mulf %3, %4 : vector<128x128xf32>
    %6 = arith.addf %0, %5 : vector<128x128xf32>
    %c0_3 = arith.constant 0 : index
    %c1 = arith.constant 1 : index
    %7 = vector.load %arg2[%c0_3, %c1] : memref<128x2xf32, #tpu.memory_space<vmem>>, vector<128x1xf32>
    %c1_4 = arith.constant 1 : index
    %c0_5 = arith.constant 0 : index
    %8 = vector.load %arg1[%c1_4, %c0_5] : memref<2x128xf32, #tpu.memory_space<vmem>>, vector<1x128xf32>
    %9 = vector.broadcast %7 : vector<128x1xf32> to vector<128x128xf32>
    %10 = vector.broadcast %8 : vector<1x128xf32> to vector<128x128xf32>
    %11 = arith.mulf %9, %10 : vector<128x128xf32>
    %12 = arith.addf %6, %11 : vector<128x128xf32>
    %c0_6 = arith.constant 0 : index
    %c0_7 = arith.constant 0 : index
    %13 = vector.load %arg3[%c0_6, %c0_7] : memref<128x1xf32, #tpu.memory_space<vmem>>, vector<128x1xf32>
    %14 = vector.broadcast %13 : vector<128x1xf32> to vector<128x128xf32>
    %15 = arith.addf %12, %14 : vector<128x128xf32>
    %cst_8 = arith.constant 5.000000e-01 : f32
    %16 = vector.broadcast %cst_8 : f32 to vector<128x128xf32>
    %17 = arith.mulf %16, %15 : vector<128x128xf32>
    %cst_9 = arith.constant 0.707106769 : f32
    %18 = vector.broadcast %cst_9 : f32 to vector<128x128xf32>
    %19 = arith.mulf %15, %18 : vector<128x128xf32>
    %20 = math.erf %19 : vector<128x128xf32>
    %cst_10 = arith.constant 1.000000e+00 : f32
    %21 = vector.broadcast %cst_10 : f32 to vector<128x128xf32>
    %22 = arith.addf %21, %20 : vector<128x128xf32>
    %23 = arith.mulf %17, %22 : vector<128x128xf32>
    %24 = arith.truncf %23 : vector<128x128xf32> to vector<128x128xbf16>
    %c0_11 = arith.constant 0 : index
    %c0_12 = arith.constant 0 : index
    %25 = vector.load %arg4[%c0_11, %c0_12] : memref<128x128xbf16, #tpu.memory_space<vmem>>, vector<128x128xbf16>
    %cst_13 = arith.constant dense<0.000000e+00> : vector<128x128xf32>
    %26 = tpu.matmul %25, %24, %cst_13 {dimension_numbers = #tpu.dot_dimension_numbers<[1], [0], [0], [1], [0, 0, 1, 1], [], []>} : vector<128x128xbf16>, vector<128x128xbf16>, vector<128x128xf32> -> vector<128x128xf32>
    %c0_14 = arith.constant 0 : index
    %c0_15 = arith.constant 0 : index
    %27 = vector.load %arg5[%c0_14, %c0_15] : memref<128x1xf32, #tpu.memory_space<vmem>>, vector<128x1xf32>
    %28 = vector.broadcast %27 : vector<128x1xf32> to vector<128x128xf32>
    %29 = arith.addf %26, %28 : vector<128x128xf32>
    %cst_16 = arith.constant 5.000000e-01 : f32
    %30 = vector.broadcast %cst_16 : f32 to vector<128x128xf32>
    %31 = arith.mulf %30, %29 : vector<128x128xf32>
    %cst_17 = arith.constant 0.707106769 : f32
    %32 = vector.broadcast %cst_17 : f32 to vector<128x128xf32>
    %33 = arith.mulf %29, %32 : vector<128x128xf32>
    %34 = math.erf %33 : vector<128x128xf32>
    %cst_18 = arith.constant 1.000000e+00 : f32
    %35 = vector.broadcast %cst_18 : f32 to vector<128x128xf32>
    %36 = arith.addf %35, %34 : vector<128x128xf32>
    %37 = arith.mulf %31, %36 : vector<128x128xf32>
    %38 = arith.truncf %37 : vector<128x128xf32> to vector<128x128xbf16>
    %c0_19 = arith.constant 0 : index
    %c0_20 = arith.constant 0 : index
    %39 = vector.load %arg6[%c0_19, %c0_20] : memref<8x128xbf16, #tpu.memory_space<vmem>>, vector<8x128xbf16>
    %cst_21 = arith.constant dense<0.000000e+00> : vector<8x128xf32>
    %40 = tpu.matmul %39, %38, %cst_21 {dimension_numbers = #tpu.dot_dimension_numbers<[1], [0], [0], [1], [0, 0, 1, 1], [], []>} : vector<8x128xbf16>, vector<128x128xbf16>, vector<8x128xf32> -> vector<8x128xf32>
    %c0_22 = arith.constant 0 : index
    %c0_23 = arith.constant 0 : index
    %41 = vector.load %arg7[%c0_22, %c0_23] : memref<8x1xf32, #tpu.memory_space<vmem>>, vector<8x1xf32>
    %42 = vector.broadcast %41 : vector<8x1xf32> to vector<8x128xf32>
    %43 = arith.addf %40, %42 : vector<8x128xf32>
    %c0_24 = arith.constant 0 : index
    %c0_25 = arith.constant 0 : index
    %44 = vector.load %arg8[%c0_24, %c0_25] : memref<8x128xf32, #tpu.memory_space<vmem>>, vector<8x128xf32>
    tpu.vector_store %arg8[%c0_24, %c0_25], %43 {strides = array<i32>} : memref<8x128xf32, #tpu.memory_space<vmem>>, vector<8x128xf32>,
    return
  }
  func.func @transform_0(%arg0: i32) -> (i32, i32) {
    %c0_i32 = arith.constant 0 : i32
    %c0_i32_0 = arith.constant 0 : i32
    return %c0_i32, %arg0 : i32, i32
  }
  func.func @transform_1(%arg0: i32) -> (i32, i32) {
    %c0_i32 = arith.constant 0 : i32
    %c0_i32_0 = arith.constant 0 : i32
    %c0_i32_1 = arith.constant 0 : i32
    return %c0_i32, %c0_i32_0 : i32, i32
  }
  func.func @transform_2(%arg0: i32) -> (i32, i32) {
    %c0_i32 = arith.constant 0 : i32
    %c0_i32_0 = arith.constant 0 : i32
    %c0_i32_1 = arith.constant 0 : i32
    return %c0_i32, %c0_i32_0 : i32, i32
  }
  func.func @transform_3(%arg0: i32) -> (i32, i32) {
    %c0_i32 = arith.constant 0 : i32
    %c0_i32_0 = arith.constant 0 : i32
    %c0_i32_1 = arith.constant 0 : i32
    return %c0_i32, %c0_i32_0 : i32, i32
  }
  func.func @transform_4(%arg0: i32) -> (i32, i32) {
    %c0_i32 = arith.constant 0 : i32
    %c0_i32_0 = arith.constant 0 : i32
    %c0_i32_1 = arith.constant 0 : i32
    return %c0_i32, %c0_i32_0 : i32, i32
  }
  func.func @transform_5(%arg0: i32) -> (i32, i32) {
    %c0_i32 = arith.constant 0 : i32
    %c0_i32_0 = arith.constant 0 : i32
    %c0_i32_1 = arith.constant 0 : i32
    return %c0_i32, %c0_i32_0 : i32, i32
  }
  func.func @transform_6(%arg0: i32) -> (i32, i32) {
    %c0_i32 = arith.constant 0 : i32
    %c0_i32_0 = arith.constant 0 : i32
    %c0_i32_1 = arith.constant 0 : i32
    return %c0_i32, %c0_i32_0 : i32, i32
  }
  func.func @transform_7(%arg0: i32) -> (i32, i32) {
    %c0_i32 = arith.constant 0 : i32
    %c0_i32_0 = arith.constant 0 : i32
    return %c0_i32, %arg0 : i32, i32
  }
}

</mosaic_0001>

<bundles_post_ra>
// kernel: tpu_custom_call.1
= control target key start
LH: loop header
LB: loop body
LE: loop exit
PB: predicated region body
PF: predicated region fallthrough
CT: control target
= control target key end

     0   :  { %v1075_v2 = vmov 1   ;;  %v1076_v7 = vmov 0   ;;  %s1421_s0 = inlined_call_operand.vmem [shape: f32[2,128], index: 0, kind: input, shape index: {}]   ;;  %s1422_s1 = inlined_call_operand.vmem [shape: f32[128,2], index: 1, kind: input, shape index: {}]   ;;  %s1423_s2 = inlined_call_operand.vmem [shape: f32[128,1], index: 2, kind: input, shape index: {}]   ;;  %s1424_s3 = inlined_call_operand.vmem [shape: bf16[128,128], index: 3, kind: input, shape index: {}]   ;;  %s1425_s4 = inlined_call_operand.vmem [shape: f32[128,1], index: 4, kind: input, shape index: {}]   ;;  %s1426_s5 = inlined_call_operand.vmem [shape: bf16[8,128], index: 5, kind: input, shape index: {}]   ;;  %s1427_s6 = inlined_call_operand.vmem [shape: f32[8,1], index: 6, kind: input, shape index: {}]   ;;  %s1428_s7 = inlined_call_operand.hbm [shape: f32[8,128], index: 7, kind: output, shape index: {}]  }
   0x1   :  { %v30_v0 = vld [vmem:[%s1422_s1 + $0x10] sm:$0xff]  ;;  %v28_v1 = vld [vmem:[%s1422_s1] sm:$0xff]  ;;  %963 = vset.pattern.permute.xlu0 %v1075_v2  ;;  %961 = vset.pattern.permute.xlu1 %v1075_v2  ;;  %v29_v4 = vld [vmem:[%s1422_s1 + $0x8] sm:$0xff] }
   0x2   :  { %171 = vperm.xlu0 %963, %v30_v0   ;;  %163 = vperm.xlu1 %961, %v28_v1   ;;  %v32_v3 = vld [vmem:[%s1422_s1 + $0x20] sm:$0xff]  ;;  %v34_v5 = vld [vmem:[%s1422_s1 + $0x30] sm:$0xff]  ;;  %v31_v6 = vld [vmem:[%s1422_s1 + $0x18] sm:$0xff] }
   0x3   :  { %v36_v8 = vld [vmem:[%s1422_s1 + $0x40] sm:$0xff]  ;;  %v38_v9 = vld [vmem:[%s1422_s1 + $0x50] sm:$0xff] }
   0x4   :  { %v262_v10 = vld [vmem:[%s1423_s2] sm:$0xff] }
   0x5   :  { %v1154_v11 = vld [vmem:[%s1422_s1 + $0x60] sm:$0xff] }
   0x6   :  { %179 = vperm.xlu0 %963, %v32_v3   ;;  %167 = vperm.xlu1 %961, %v29_v4  }
   0xa   :  { %187 = vperm.xlu0 %963, %v34_v5   ;;  %962 = vset.pattern.permute.xlu1 %v1076_v7 }
   0xb   :  { %62 = vperm.xlu1 %962, %v31_v6  }
   0xe   :  { %195 = vperm.xlu0 %963, %v36_v8  }
   0xf   :  { %964 = vset.pattern.permute.xlu1 %v1075_v2 }
  0x10   :  { %175 = vperm.xlu1 %964, %v31_v6  }
  0x12   :  { %203 = vperm.xlu0 %963, %v38_v9  }
  0x14   :  { %965 = vset.pattern.permute.xlu1 %v1076_v7 }
  0x15   :  { %12 = vsyncpa [#allocation3], 0  ;;  %280 = vperm.xlu1 %965, %v262_v10   ;;  %v1161_v12 = vld [vmem:[%s1422_s1 + $0x70] sm:$0xff]  ;;  %v33_v13 = vld [vmem:[%s1422_s1 + $0x28] sm:$0xff]  ;;  %vm1078_vm0 = vmmov 0   ;;  %s1079_s20 = smov [#allocation2]  }
  0x16   :  { %211 = vperm.xlu0 %963, %v1154_v11   ;;  %v264_v14 = vld [vmem:[%s1423_s2 + $0x10] sm:$0xff]  ;;  %v263_v15 = vld [vmem:[%s1423_s2 + $0x8] sm:$0xff]  ;;  %v265_v16 = vld [vmem:[%s1423_s2 + $0x18] sm:$0xff]  ;;  %s861_s21 = sshll.u32 %s1079_s20, 4  ;;  %s862_s21 = int_to_ptr.vmem [resolvable:$true] %s861_s21 }
  0x17   :  { %v35_v17 = vld [vmem:[%s1422_s1 + $0x38] sm:$0xff]  ;;  %v267_v18 = vld [vmem:[%s1423_s2 + $0x28] sm:$0xff]  ;;  %v266_v20 = vld [vmem:[%s1423_s2 + $0x20] sm:$0xff]  ;;  %s1051_s22 = scalar_lea.vmem %s862_s21, 128  ;;  %p1056_p1 = scmp.lt.s32.totalorder %s862_s21, %s862_s21 }
  0x18   :  { %v269_v19 = vld [vmem:[%s1423_s2 + $0x38] sm:$0xff]  ;;  %v271_v21 = vld [vmem:[%s1423_s2 + $0x48] sm:$0xff]  ;;  %v478_v25 = vld [vmem:[%s1425_s4] sm:$0xff]  ;;  %p1052_p0 = scmp.ne.s32.totalorder %s862_s21, %s1051_s22  ;;  %p1057_p2 = scmp.lt.s32.totalorder %s1051_s22, %s1051_s22 }
  0x19   :  { %67 = vperm.xlu1 %965, %v32_v3   ;;  %v273_v22 = vld [vmem:[%s1423_s2 + $0x58] sm:$0xff]  ;;  %v37_v23 = vld [vmem:[%s1422_s1 + $0x48] sm:$0xff]  ;;  %v480_v26 = vld [vmem:[%s1425_s4 + $0x10] sm:$0xff] }
  0x1a   :  { %219 = vperm.xlu0 %963, %v1161_v12   ;;  %v275_v24 = vld [vmem:[%s1423_s2 + $0x68] sm:$0xff]  ;;  %v268_v27 = vld [vmem:[%s1423_s2 + $0x30] sm:$0xff]  ;;  %v482_v28 = vld [vmem:[%s1425_s4 + $0x20] sm:$0xff]  ;;  %p1058_p3 = por %p1057_p2, %p1056_p1 }
  0x1b   :  { %v484_v29 = vld [vmem:[%s1425_s4 + $0x30] sm:$0xff]  ;;  %v39_v30 = vld [vmem:[%s1422_s1 + $0x58] sm:$0xff]  ;;  %v486_v31 = vld [vmem:[%s1425_s4 + $0x40] sm:$0xff] }
  0x1c   :  { %v488_v32 = vld [vmem:[%s1425_s4 + $0x50] sm:$0xff]  ;;  %v270_v33 = vld [vmem:[%s1423_s2 + $0x40] sm:$0xff]  ;;  %v41_v36 = vld [vmem:[%s1422_s1 + $0x68] sm:$0xff]  ;;  %p1059_p4 = pnand %p1058_p3, %p1052_p0 }
  0x1d   :  { %72 = vperm.xlu1 %965, %v33_v13   ;;  %v490_v34 = vld [vmem:[%s1425_s4 + $0x60] sm:$0xff]  ;;  %v492_v35 = vld [vmem:[%s1425_s4 + $0x70] sm:$0xff]  ;;  %v43_v39 = vld [vmem:[%s1422_s1 + $0x78] sm:$0xff] }
  0x1e   :  { %976 = vset.pattern.permute.xlu0 %v1076_v7  ;;  %v808_v37 = vld [vmem:[%s1427_s6] sm:$0xff]  ;;  %v272_v38 = vld [vmem:[%s1423_s2 + $0x50] sm:$0xff]  ;;  %v277_v46 = vld [vmem:[%s1423_s2 + $0x78] sm:$0xff] }
  0x1f   :  { %47 = vperm.xlu0 %976, %v28_v1   ;;  %v274_v40 = vld [vmem:[%s1423_s2 + $0x60] sm:$0xff]  ;;  %v276_v43 = vld [vmem:[%s1423_s2 + $0x70] sm:$0xff]  ;;  %v479_v49 = vld [vmem:[%s1425_s4 + $0x8] sm:$0xff] }
  0x20   :  { %v481_v51 = vld [vmem:[%s1425_s4 + $0x18] sm:$0xff]  ;;  %v483_v54 = vld [vmem:[%s1425_s4 + $0x28] sm:$0xff]  ;;  %v1299_v61 = vld [vmem:[%s1421_s0 + $0x1] ss:$0 sm:$0xff] }
  0x21   :  { %966 = vset.pattern.permute.xlu1 %v1075_v2  ;;  %v485_v57 = vld [vmem:[%s1425_s4 + $0x38] sm:$0xff]  ;;  %v487_v60 = vld [vmem:[%s1425_s4 + $0x48] sm:$0xff]  ;;  %v1304_v63 = vld [vmem:[%s1421_s0] ss:$0 sm:$0xff] }
  0x22   :  { %183 = vperm.xlu1 %966, %v33_v13   ;;  %v489_v1 = vld [vmem:[%s1425_s4 + $0x58] sm:$0xff] }
  0x23   :  { %52 = vperm.xlu0 %976, %v29_v4   ;;  %v979_v4 = vld [vmem:[%s1424_s3] sm:$0xff]  }
  0x24   :  { %920 = vmatprep.mubr.bf16.mxu0 %v979_v4 }
  0x26   :  { %967 = vset.pattern.permute.xlu1 %v1076_v7 }
  0x27   :  { %57 = vperm.xlu0 %976, %v30_v0   ;;  %290 = vperm.xlu1 %967, %v264_v14   ;;  %v493_v14 = vld [vmem:[%s1425_s4 + $0x78] sm:$0xff] }
  0x2b   :  { %285 = vperm.xlu0 %976, %v263_v15   ;;  %77 = vperm.xlu1 %967, %v34_v5  }
  0x2f   :  { %295 = vperm.xlu0 %976, %v265_v16   ;;  %82 = vperm.xlu1 %967, %v35_v17  }
  0x33   :  { %305 = vperm.xlu0 %976, %v267_v18   ;;  %968 = vset.pattern.permute.xlu1 %v1075_v2 }
  0x34   :  { %191 = vperm.xlu1 %968, %v35_v17  }
  0x37   :  { %315 = vperm.xlu0 %976, %v269_v19  }
  0x38   :  { %969 = vset.pattern.permute.xlu1 %v1076_v7 }
  0x39   :  { %300 = vperm.xlu1 %969, %v266_v20  }
  0x3b   :  { %325 = vperm.xlu0 %976, %v271_v21  }
  0x3d   :  { %87 = vperm.xlu1 %969, %v36_v8   ;;  %v491_v8 = vld [vmem:[%s1425_s4 + $0x68] sm:$0xff] }
  0x3f   :  { %335 = vperm.xlu0 %976, %v273_v22  }
  0x41   :  { %92 = vperm.xlu1 %969, %v37_v23  }
  0x43   :  { %345 = vperm.xlu0 %976, %v275_v24  }
  0x45   :  { %970 = vset.pattern.permute.xlu1 %v1075_v2 }
  0x46   :  { %199 = vperm.xlu1 %970, %v37_v23  }
  0x47   :  { %496 = vperm.xlu0 %976, %v478_v25  }
  0x4a   :  { %971 = vset.pattern.permute.xlu1 %v1076_v7 }
  0x4b   :  { %506 = vperm.xlu0 %976, %v480_v26   ;;  %310 = vperm.xlu1 %971, %v268_v27  }
  0x4f   :  { %516 = vperm.xlu0 %976, %v482_v28   ;;  %97 = vperm.xlu1 %971, %v38_v9  }
  0x53   :  { %526 = vperm.xlu0 %976, %v484_v29   ;;  %102 = vperm.xlu1 %971, %v39_v30  }
  0x57   :  { %536 = vperm.xlu0 %976, %v486_v31   ;;  %972 = vset.pattern.permute.xlu1 %v1075_v2 }
  0x58   :  { %207 = vperm.xlu1 %972, %v39_v30  }
  0x5b   :  { %546 = vperm.xlu0 %976, %v488_v32  }
  0x5c   :  { %973 = vset.pattern.permute.xlu1 %v1076_v7 }
  0x5d   :  { %320 = vperm.xlu1 %973, %v270_v33  }
  0x5f   :  { %556 = vperm.xlu0 %976, %v490_v34  }
  0x61   :  { %107 = vperm.xlu1 %973, %v1154_v11  }
  0x63   :  { %566 = vperm.xlu0 %976, %v492_v35  }
  0x65   :  { %112 = vperm.xlu1 %973, %v41_v36  }
  0x67   :  { %811 = vperm.xlu0 %976, %v808_v37  }
  0x69   :  { %974 = vset.pattern.permute.xlu1 %v1075_v2 }
  0x6a   :  { %215 = vperm.xlu1 %974, %v41_v36  }
  0x6e   :  { %975 = vset.pattern.permute.xlu1 %v1076_v7 }
  0x6f   :  { %330 = vperm.xlu1 %975, %v272_v38  }
  0x73   :  { %117 = vperm.xlu1 %975, %v1161_v12  }
  0x77   :  { %122 = vperm.xlu1 %975, %v43_v39  }
  0x7b   :  { %977 = vset.pattern.permute.xlu1 %v1075_v2 }
  0x7c   :  { %223 = vperm.xlu1 %977, %v43_v39  }
  0x80   :  { %978 = vset.pattern.permute.xlu1 %v1076_v7 }
  0x81   :  { %340 = vperm.xlu1 %978, %v274_v40   ;;  %v164_v41 = vpop.permute.xlu1 %163  ;;  %v172_v42 = vpop.permute.xlu0 %171 }
  0x82   :  { %v230_v2 = vmul.f32 %v1299_v61, %v164_v41  ;;  %v232_v10 = vmul.f32 %v1299_v61, %v172_v42 }
  0x85   :  { %350 = vperm.xlu1 %978, %v276_v43   ;;  %v168_v44 = vpop.permute.xlu1 %167  ;;  %v1266_v45 = vpop.permute.xlu0 %179 }
  0x86   :  { %v231_v15 = vmul.f32 %v1299_v61, %v168_v44  ;;  %v234_v37 = vmul.f32 %v1299_v61, %v1266_v45 }
  0x89   :  { %355 = vperm.xlu1 %978, %v277_v46   ;;  %v1271_v47 = vpop.permute.xlu0 %187 }
  0x8a   :  { %v63_v48 = vpop.permute.xlu1 %62 }
  0x8b   :  { %v132_v23 = vmul.f32 %v1304_v63, %v63_v48 }
  0x8d   :  { %501 = vperm.xlu1 %978, %v479_v49   ;;  %v1276_v50 = vpop.permute.xlu0 %195 }
  0x8f   :  { %v176_v52 = vpop.permute.xlu1 %175 }
  0x90   :  { %v233_v18 = vmul.f32 %v1299_v61, %v176_v52 }
  0x91   :  { %511 = vperm.xlu1 %978, %v481_v51   ;;  %v1281_v53 = vpop.permute.xlu0 %203 }
  0x92   :  { %v249_v29 = vadd.f32 %v233_v18, %v132_v23 }
  0x94   :  { %v281_v55 = vpop.permute.xlu1 %280 }
  0x95   :  { %521 = vperm.xlu1 %978, %v483_v54   ;;  %v1286_v56 = vpop.permute.xlu0 %211 }
  0x98   :  { %v68_v58 = vpop.permute.xlu1 %67 }
  0x99   :  { %531 = vperm.xlu1 %978, %v485_v57   ;;  %v1291_v59 = vpop.permute.xlu0 %219  ;;  %v133_v38 = vmul.f32 %v1304_v63, %v68_v58 }
  0x9b   :  { %v250_v43 = vadd.f32 %v234_v37, %v133_v38  ;;  %v238_v38 = vmul.f32 %v1299_v61, %v1276_v50 }
  0x9c   :  { %v73_v62 = vpop.permute.xlu1 %72 }
  0x9d   :  { %541 = vperm.xlu1 %978, %v487_v60   ;;  %v134_v32 = vmul.f32 %v1304_v63, %v73_v62 }
  0x9e   :  { %v48_v0 = vpop.permute.xlu0 %47 }
  0x9f   :  { %v129_v3 = vmul.f32 %v1304_v63, %v48_v0 }
  0xa1   :  { %v246_v5 = vadd.f32 %v230_v2, %v129_v3  ;;  %551 = vperm.xlu1 %978, %v489_v1   ;;  %v184_v6 = vpop.permute.xlu1 %183 }
  0xa2   :  { %v53_v7 = vpop.permute.xlu0 %52  ;;  %v235_v26 = vmul.f32 %v1299_v61, %v184_v6 }
  0xa3   :  { %v358_v9 = vadd.f32 %v281_v55, %v246_v5  ;;  %v130_v11 = vmul.f32 %v1304_v63, %v53_v7 }
  0xa4   :  { %v251_v35 = vadd.f32 %v235_v26, %v134_v32 }
  0xa5   :  { %561 = vperm.xlu1 %978, %v491_v8   ;;  %v390_v17 = vmul.f32 0.70710677, %v358_v9  ;;  %v247_v20 = vadd.f32 %v231_v15, %v130_v11  ;;  %v374_v52 = vmul.f32 0.5, %v358_v9  ;;  %v236_v15 = vmul.f32 %v1299_v61, %v1271_v47 }
  0xa6   :  { %v58_v12 = vpop.permute.xlu0 %57  ;;  %v291_v13 = vpop.permute.xlu1 %290 }
  0xa7   :  { %v131_v16 = vmul.f32 %v1304_v63, %v58_v12  ;;  %987 = verf.f32 %v390_v17 }
  0xa9   :  { %v248_v19 = vadd.f32 %v232_v10, %v131_v16  ;;  %571 = vperm.xlu1 %978, %v493_v14  }
  0xaa   :  { %v286_v21 = vpop.permute.xlu0 %285  ;;  %v78_v22 = vpop.permute.xlu1 %77 }
  0xab   :  { %v360_v24 = vadd.f32 %v291_v13, %v248_v19  ;;  %v359_v25 = vadd.f32 %v286_v21, %v247_v20  ;;  %v135_v16 = vmul.f32 %v1304_v63, %v78_v22 }
  0xad   :  { %v392_v27 = vmul.f32 0.70710677, %v360_v24  ;;  %v391_v28 = vmul.f32 0.70710677, %v359_v25  ;;  %v375_v54 = vmul.f32 0.5, %v359_v25  ;;  %v376_v3 = vmul.f32 0.5, %v360_v24 }
  0xae   :  { %v296_v30 = vpop.permute.xlu0 %295  ;;  %v83_v31 = vpop.permute.xlu1 %82  ;;  %v252_v25 = vadd.f32 %v236_v15, %v135_v16 }
  0xaf   :  { %989 = verf.f32 %v392_v27  ;;  %v361_v33 = vadd.f32 %v296_v30, %v249_v29  ;;  %v136_v0 = vmul.f32 %v1304_v63, %v83_v31 }
  0xb0   :  { %991 = verf.f32 %v391_v28 }
  0xb1   :  { %v393_v34 = vmul.f32 0.70710677, %v361_v33  ;;  %v988_v42 = vpop.eup %987  ;;  %v377_v4 = vmul.f32 0.5, %v361_v33 }
  0xb2   :  { %v306_v36 = vpop.permute.xlu0 %305  ;;  %v422_v49 = vadd.f32 1.0, %v988_v42 }
  0xb3   :  { %993 = verf.f32 %v393_v34  ;;  %v363_v39 = vadd.f32 %v306_v36, %v251_v35  ;;  %v192_v40 = vpop.permute.xlu1 %191 }
  0xb4   :  { %v237_v55 = vmul.f32 %v1299_v61, %v192_v40  ;;  %v438_v1 = vmul.f32 %v422_v49, %v374_v52 }
  0xb5   :  { %v395_v41 = vmul.f32 0.70710677, %v363_v39  ;;  %v379_v21 = vmul.f32 0.5, %v363_v39 }
  0xb6   :  { %v253_v6 = vadd.f32 %v237_v55, %v136_v0  ;;  %v316_v10 = vpop.permute.xlu0 %315 }
  0xb7   :  { %995 = verf.f32 %v395_v41 }
  0xb8   :  { %v301_v44 = vpop.permute.xlu1 %300  ;;  %v365_v14 = vadd.f32 %v316_v10, %v253_v6 }
  0xb9   :  { %v990_v46 = vpop.eup %989  ;;  %v362_v48 = vadd.f32 %v301_v44, %v250_v43 }
  0xba   :  { %v992_v51 = vpop.eup %991  ;;  %v424_v60 = vadd.f32 1.0, %v990_v46  ;;  %v397_v20 = vmul.f32 0.70710677, %v365_v14  ;;  %v326_v35 = vpop.permute.xlu0 %325  ;;  %v381_v44 = vmul.f32 0.5, %v365_v14 }
  0xbb   :  { %v394_v57 = vmul.f32 0.70710677, %v362_v48  ;;  %v423_v45 = vadd.f32 1.0, %v992_v51  ;;  %v378_v23 = vmul.f32 0.5, %v362_v48 }
  0xbc   :  { %v88_v58 = vpop.permute.xlu1 %87  ;;  %v440_v8 = vmul.f32 %v424_v60, %v376_v3 }
  0xbd   :  { %v994_v62 = vpop.eup %993  ;;  %997 = verf.f32 %v394_v57  ;;  %v439_v2 = vmul.f32 %v423_v45, %v375_v54  ;;  %v137_v39 = vmul.f32 %v1304_v63, %v88_v58 }
  0xbe   :  { %v425_v5 = vadd.f32 1.0, %v994_v62  ;;  %999 = verf.f32 %v397_v20 }
  0xbf   :  { %v454_v7 = vpack.c.bf16 %v439_v2, %v438_v1  ;;  %v254_v49 = vadd.f32 %v238_v38, %v137_v39  ;;  %v336_v1 = vpop.permute.xlu0 %335 }
  0xc0   :  { %v441_v9 = vmul.f32 %v425_v5, %v377_v4  ;;  %v93_v11 = vpop.permute.xlu1 %92 }
  0xc1   :  { %904 = vmatprep.subr.bf16.mxu0 %v454_v7  ;;  %v996_v13 = vpop.eup %995  ;;  %v138_v32 = vmul.f32 %v1304_v63, %v93_v11 }
  0xc2   :  { %905 = vmatpush3.bf16.msra.mxu0 %v454_v7  ;;  %v455_v12 = vpack.c.bf16 %v441_v9, %v440_v8  ;;  %v427_v18 = vadd.f32 1.0, %v996_v13  ;;  %v240_v8 = vmul.f32 %v1299_v61, %v1281_v53 }
  0xc4   :  { %906 = vmatprep.subr.bf16.mxu0 %v455_v12  ;;  %v443_v26 = vmul.f32 %v427_v18, %v379_v21 }
  0xc5   :  { %v200_v17 = vpop.permute.xlu1 %199 }
  0xc6   :  { %907 = vmatpush3.bf16.msra.mxu0 %v455_v12  ;;  %v239_v31 = vmul.f32 %v1299_v61, %v200_v17 }
  0xc7   :  { %v998_v19 = vpop.eup %997 }
  0xc8   :  { %v426_v24 = vadd.f32 1.0, %v998_v19  ;;  %v255_v33 = vadd.f32 %v239_v31, %v138_v32  ;;  %v1000_v36 = vpop.eup %999 }
  0xc9   :  { %v429_v41 = vadd.f32 1.0, %v1000_v36 }
  0xca   :  { %v442_v27 = vmul.f32 %v426_v24, %v378_v23  ;;  %v311_v28 = vpop.permute.xlu1 %310  ;;  %v367_v37 = vadd.f32 %v326_v35, %v255_v33 }
  0xcb   :  { %v364_v29 = vadd.f32 %v311_v28, %v252_v25  ;;  %v445_v51 = vmul.f32 %v429_v41, %v381_v44  ;;  %v346_v25 = vpop.permute.xlu0 %345 }
  0xcc   :  { %v456_v30 = vpack.c.bf16 %v443_v26, %v442_v27  ;;  %v399_v43 = vmul.f32 0.70710677, %v367_v37  ;;  %v383_v10 = vmul.f32 0.5, %v367_v37 }
  0xcd   :  { %v396_v47 = vmul.f32 0.70710677, %v364_v29  ;;  %v380_v46 = vmul.f32 0.5, %v364_v29 }
  0xce   :  { %908 = vmatprep.subr.bf16.mxu0 %v456_v30  ;;  %v98_v22 = vpop.permute.xlu1 %97 }
  0xcf   :  { %1001 = verf.f32 %v396_v47  ;;  %909 = vmatpush3.bf16.msra.mxu0 %v456_v30  ;;  %v139_v4 = vmul.f32 %v1304_v63, %v98_v22  ;;  %v242_v47 = vmul.f32 %v1299_v61, %v1286_v56 }
  0xd0   :  { %1003 = verf.f32 %v399_v43 }
  0xd1   :  { %v256_v13 = vadd.f32 %v240_v8, %v139_v4 }
  0xd2   :  { %v103_v34 = vpop.permute.xlu1 %102 }
  0xd3   :  { %v140_v58 = vmul.f32 %v1304_v63, %v103_v34 }
  0xd7   :  { %v208_v40 = vpop.permute.xlu1 %207 }
  0xd8   :  { %v241_v45 = vmul.f32 %v1299_v61, %v208_v40  ;;  %v244_v40 = vmul.f32 %v1299_v61, %v1291_v59 }
  0xd9   :  { %v1002_v42 = vpop.eup %1001 }
  0xda   :  { %v428_v48 = vadd.f32 1.0, %v1002_v42  ;;  %v257_v62 = vadd.f32 %v241_v45, %v140_v58  ;;  %v1004_v2 = vpop.eup %1003 }
  0xdb   :  { %v431_v6 = vadd.f32 1.0, %v1004_v2 }
  0xdc   :  { %v444_v52 = vmul.f32 %v428_v48, %v380_v46  ;;  %v321_v54 = vpop.permute.xlu1 %320  ;;  %v369_v3 = vadd.f32 %v336_v1, %v257_v62 }
  0xdd   :  { %v366_v55 = vadd.f32 %v321_v54, %v254_v49  ;;  %v447_v16 = vmul.f32 %v431_v6, %v383_v10  ;;  %v980_v10 = vld [vmem:[%s1424_s3 + $0x8] sm:$0xff]  }
  0xde   :  { %v457_v57 = vpack.c.bf16 %v445_v51, %v444_v52  ;;  %v401_v9 = vmul.f32 0.70710677, %v369_v3  ;;  %v385_v32 = vmul.f32 0.5, %v369_v3 }
  0xdf   :  { %v398_v60 = vmul.f32 0.70710677, %v366_v55  ;;  %v382_v11 = vmul.f32 0.5, %v366_v55 }
  0xe0   :  { %910 = vmatprep.subr.bf16.mxu0 %v457_v57  ;;  %v108_v50 = vpop.permute.xlu1 %107 }
  0xe1   :  { %1005 = verf.f32 %v398_v60  ;;  %911 = vmatpush3.bf16.msra.mxu0 %v457_v57  ;;  %v141_v28 = vmul.f32 %v1304_v63, %v108_v50 }
  0xe2   :  { %1007 = verf.f32 %v401_v9 }
  0xe3   :  { %v258_v36 = vadd.f32 %v242_v47, %v141_v28 }
  0xe4   :  { %v113_v0 = vpop.permute.xlu1 %112 }
  0xe5   :  { %v142_v23 = vmul.f32 %v1304_v63, %v113_v0 }
  0xe9   :  { %v216_v5 = vpop.permute.xlu1 %215 }
  0xea   :  { %v243_v19 = vmul.f32 %v1299_v61, %v216_v5 }
  0xeb   :  { %v1006_v7 = vpop.eup %1005 }
  0xec   :  { %v430_v12 = vadd.f32 1.0, %v1006_v7  ;;  %v259_v53 = vadd.f32 %v243_v19, %v142_v23  ;;  %v1008_v26 = vpop.eup %1007 }
  0xed   :  { %v433_v30 = vadd.f32 1.0, %v1008_v26 }
  0xee   :  { %v446_v14 = vmul.f32 %v430_v12, %v382_v11  ;;  %v331_v15 = vpop.permute.xlu1 %330  ;;  %v371_v27 = vadd.f32 %v346_v25, %v259_v53  ;;  %v981_v11 = vld [vmem:[%s1424_s3 + $0x10] sm:$0xff]   ;;  %v982_v12 = vld [vmem:[%s1424_s3 + $0x18] sm:$0xff]  }
  0xef   :  { %v368_v17 = vadd.f32 %v331_v15, %v256_v13  ;;  %v449_v39 = vmul.f32 %v433_v30, %v385_v32  ;;  %v983_v13 = vld [vmem:[%s1424_s3 + $0x20] sm:$0xff]   ;;  %v985_v15 = vld [vmem:[%s1424_s3 + $0x30] sm:$0xff]  }
  0xf0   :  { %v458_v18 = vpack.c.bf16 %v447_v16, %v446_v14  ;;  %v403_v22 = vmul.f32 0.70710677, %v371_v27  ;;  %v984_v14 = vld [vmem:[%s1424_s3 + $0x28] sm:$0xff]   ;;  %v986_v16 = vld [vmem:[%s1424_s3 + $0x38] sm:$0xff]  }
  0xf1   :  { %v400_v20 = vmul.f32 0.70710677, %v368_v17  ;;  %v384_v33 = vmul.f32 0.5, %v368_v17  ;;  %v1077_v17 = vmov 0.0  }
  0xf2   :  { %912 = vmatprep.subr.bf16.mxu0 %v458_v18  ;;  %v118_v21 = vpop.permute.xlu1 %117  ;;  %936 = vmatprep.subr.bf16.mxu1 %v1077_v17 }
  0xf3   :  { %1009 = verf.f32 %v400_v20  ;;  %913 = vmatpush3.bf16.msra.mxu0 %v458_v18  ;;  %v143_v35 = vmul.f32 %v1304_v63, %v118_v21  ;;  %952 = vmatprep.mubr.msk.bf16.mxu1 %vm1078_vm0, %v1077_v17  ;;  %v497_v18 = vpop.permute.xlu0 %496 }
  0xf4   :  { %1011 = verf.f32 %v403_v22 }
  0xf5   :  { %v260_v56 = vadd.f32 %v244_v40, %v143_v35 }
  0xf6   :  { %v123_v24 = vpop.permute.xlu1 %122 }
  0xf7   :  { %v144_v48 = vmul.f32 %v1304_v63, %v123_v24  ;;  %v507_v20 = vpop.permute.xlu0 %506 }
  0xfb   :  { %v224_v29 = vpop.permute.xlu1 %223  ;;  %v517_v23 = vpop.permute.xlu0 %516 }
  0xfc   :  { %v245_v43 = vmul.f32 %v1299_v61, %v224_v29  ;;  %v387_v61 = vmul.f32 0.5, %v371_v27 }
  0xfd   :  { %v1010_v31 = vpop.eup %1009 }
  0xfe   :  { %v432_v34 = vadd.f32 1.0, %v1010_v31  ;;  %v261_v52 = vadd.f32 %v245_v43, %v144_v48  ;;  %v1012_v59 = vpop.eup %1011 }
  0xff   :  { %v435_v45 = vadd.f32 1.0, %v1012_v59  ;;  %v527_v24 = vpop.permute.xlu0 %526 }
 0x100   :  { %v448_v37 = vmul.f32 %v432_v34, %v384_v33  ;;  %v341_v38 = vpop.permute.xlu1 %340 }
 0x101   :  { %v370_v41 = vadd.f32 %v341_v38, %v258_v36  ;;  %v451_v0 = vmul.f32 %v435_v45, %v387_v61 }
 0x102   :  { %v459_v42 = vpack.c.bf16 %v449_v39, %v448_v37 }
 0x103   :  { %v402_v44 = vmul.f32 0.70710677, %v370_v41  ;;  %v386_v50 = vmul.f32 0.5, %v370_v41  ;;  %v537_v35 = vpop.permute.xlu0 %536 }
 0x104   :  { %914 = vmatprep.subr.bf16.mxu0 %v459_v42  ;;  %v351_v46 = vpop.permute.xlu1 %350 }
 0x105   :  { %1013 = verf.f32 %v402_v44  ;;  %v372_v49 = vadd.f32 %v351_v46, %v260_v56  ;;  %915 = vmatpush3.bf16.msra.mxu0 %v459_v42 }
 0x107   :  { %v404_v51 = vmul.f32 0.70710677, %v372_v49  ;;  %v388_v4 = vmul.f32 0.5, %v372_v49  ;;  %v547_v46 = vpop.permute.xlu0 %546 }
 0x108   :  { %v356_v54 = vpop.permute.xlu1 %355 }
 0x109   :  { %1015 = verf.f32 %v404_v51  ;;  %v373_v55 = vadd.f32 %v356_v54, %v261_v52 }
 0x10b   :  { %v405_v57 = vmul.f32 0.70710677, %v373_v55  ;;  %v389_v5 = vmul.f32 0.5, %v373_v55 }
 0x10c   :  { %v502_v19 = vpop.permute.xlu1 %501 }
 0x10d   :  { %1017 = verf.f32 %v405_v57 }
 0x10f   :  { %v1014_v60 = vpop.eup %1013 }
 0x110   :  { %v434_v58 = vadd.f32 1.0, %v1014_v60  ;;  %v512_v21 = vpop.permute.xlu1 %511 }
 0x112   :  { %v450_v62 = vmul.f32 %v434_v58, %v386_v50 }
 0x113   :  { %v1016_v1 = vpop.eup %1015 }
 0x114   :  { %v460_v63 = vpack.c.bf16 %v451_v0, %v450_v62  ;;  %v436_v2 = vadd.f32 1.0, %v1016_v1  ;;  %v522_v53 = vpop.permute.xlu1 %521  ;;  %v557_v0 = vpop.permute.xlu0 %556 }
 0x116   :  { %916 = vmatprep.subr.bf16.mxu0 %v460_v63  ;;  %v452_v7 = vmul.f32 %v436_v2, %v388_v4 }
 0x117   :  { %v1018_v3 = vpop.eup %1017  ;;  %917 = vmatpush3.bf16.msra.mxu0 %v460_v63 }
 0x118   :  { %v437_v6 = vadd.f32 1.0, %v1018_v3  ;;  %v532_v30 = vpop.permute.xlu1 %531 }
 0x11a   :  { %v453_v8 = vmul.f32 %v437_v6, %v389_v5 }
 0x11c   :  { %v461_v9 = vpack.c.bf16 %v453_v8, %v452_v7  ;;  %v542_v38 = vpop.permute.xlu1 %541 }
 0x11e   :  { %918 = vmatprep.subr.bf16.mxu0 %v461_v9 }
 0x11f   :  { %919 = vmatpush3.bf16.msra.mxu0 %v461_v9 }
 0x120   :  { %v552_v55 = vpop.permute.xlu1 %551 }
 0x122   :  { %921 = vmatmul.mubr.bf16.vlgmr.msra.gmra.mrb[0].mxu0 %v980_v10 }
 0x123   :  { %924 = vmatprep.mubr.bf16.mxu0 %v981_v11 }
 0x12a   :  { %925 = vmatmul.mubr.bf16.gmra.mrb[4].mxu0 %v982_v12 }
 0x12b   :  { %928 = vmatprep.mubr.bf16.mxu0 %v983_v13 }
 0x132   :  { %929 = vmatmul.mubr.bf16.gmra.mrb[8].mxu0 %v984_v14  ;;  %v562_v14 = vpop.permute.xlu1 %561 }
 0x133   :  { %932 = vmatprep.mubr.bf16.mxu0 %v985_v15 }
 0x13a   :  { %933 = vmatmul.mubr.bf16.gmra.mrb[12].mxu0 %v986_v16 }
 0x1f5   :  { %v922_v25 = vpop.f32.mrb[0].mxu0 }
 0x1f6   :  { %v665_v26 = vadd.f32 %v922_v25, %v507_v20  ;;  %v656_v27 = vpop.f32.mrb[1].mxu0 }
 0x1f7   :  { %v657_v28 = vadd.f32 %v656_v27, %v497_v18  ;;  %v923_v29 = vpop.f32.mrb[2].mxu0 }
 0x1f8   :  { %v737_v31 = vmul.f32 0.70710677, %v665_v26  ;;  %v668_v47 = vadd.f32 %v923_v29, %v512_v21  ;;  %v659_v22 = vpop.f32.mrb[3].mxu0  ;;  %v721_v60 = vmul.f32 0.5, %v665_v26 }
 0x1f9   :  { %v735_v32 = vmul.f32 0.70710677, %v657_v28  ;;  %v660_v33 = vadd.f32 %v659_v22, %v502_v19  ;;  %v719_v5 = vmul.f32 0.5, %v657_v28 }
 0x1fa   :  { %1019 = verf.f32 %v737_v31  ;;  %v738_v34 = vmul.f32 0.70710677, %v668_v47  ;;  %v722_v1 = vmul.f32 0.5, %v668_v47 }
 0x1fb   :  { %1021 = verf.f32 %v735_v32  ;;  %v736_v36 = vmul.f32 0.70710677, %v660_v33  ;;  %v720_v11 = vmul.f32 0.5, %v660_v33 }
 0x1fc   :  { %1023 = verf.f32 %v738_v34 }
 0x1fd   :  { %1025 = verf.f32 %v736_v36  ;;  %v926_v37 = vpop.f32.mrb[4].mxu0  ;;  %v572_v36 = vpop.permute.xlu1 %571 }
 0x1fe   :  { %v681_v39 = vadd.f32 %v926_v37, %v527_v24  ;;  %v672_v40 = vpop.f32.mrb[5].mxu0  ;;  %v567_v24 = vpop.permute.xlu0 %566 }
 0x1ff   :  { %v1379_v41 = vadd.f32 %v672_v40, %v517_v23  ;;  %v927_v42 = vpop.f32.mrb[6].mxu0 }
 0x200   :  { %v741_v43 = vmul.f32 0.70710677, %v681_v39  ;;  %v684_v44 = vadd.f32 %v927_v42, %v532_v30  ;;  %v675_v56 = vpop.f32.mrb[7].mxu0  ;;  %v725_v22 = vmul.f32 0.5, %v681_v39 }
 0x201   :  { %v739_v48 = vmul.f32 0.70710677, %v1379_v41  ;;  %v676_v49 = vadd.f32 %v675_v56, %v522_v53  ;;  %v723_v37 = vmul.f32 0.5, %v1379_v41 }
 0x202   :  { %1027 = verf.f32 %v741_v43  ;;  %v742_v51 = vmul.f32 0.70710677, %v684_v44  ;;  %v726_v32 = vmul.f32 0.5, %v684_v44 }
 0x203   :  { %1029 = verf.f32 %v739_v48  ;;  %v740_v52 = vmul.f32 0.70710677, %v676_v49 }
 0x204   :  { %v1020_v54 = vpop.eup %1019  ;;  %1031 = verf.f32 %v742_v51 }
 0x205   :  { %v1022_v59 = vpop.eup %1021  ;;  %1033 = verf.f32 %v740_v52  ;;  %v930_v57 = vpop.f32.mrb[8].mxu0  ;;  %v769_v61 = vadd.f32 1.0, %v1020_v54 }
 0x206   :  { %v1024_v45 = vpop.eup %1023  ;;  %v1382_v50 = vadd.f32 %v930_v57, %v547_v46  ;;  %v688_v58 = vpop.f32.mrb[9].mxu0  ;;  %v767_v4 = vadd.f32 1.0, %v1022_v59 }
 0x207   :  { %v1026_v62 = vpop.eup %1025  ;;  %v770_v63 = vadd.f32 1.0, %v1024_v45  ;;  %v1384_v2 = vadd.f32 %v688_v58, %v537_v35  ;;  %v931_v3 = vpop.f32.mrb[10].mxu0  ;;  %v785_v15 = vmul.f32 %v769_v61, %v721_v60 }
 0x208   :  { %v745_v6 = vmul.f32 0.70710677, %v1382_v50  ;;  %v1387_v7 = vadd.f32 %v931_v3, %v552_v55  ;;  %v691_v8 = vpop.f32.mrb[11].mxu0  ;;  %v768_v9 = vadd.f32 1.0, %v1026_v62  ;;  %v783_v19 = vmul.f32 %v767_v4, %v719_v5 }
 0x209   :  { %v786_v10 = vmul.f32 %v770_v63, %v722_v1  ;;  %v743_v12 = vmul.f32 0.70710677, %v1384_v2  ;;  %v1390_v13 = vadd.f32 %v691_v8, %v542_v38  ;;  %v724_v38 = vmul.f32 0.5, %v676_v49 }
 0x20a   :  { %1035 = verf.f32 %v745_v6  ;;  %v746_v16 = vmul.f32 0.70710677, %v1387_v7  ;;  %v784_v20 = vmul.f32 %v768_v9, %v720_v11  ;;  %v729_v62 = vmul.f32 0.5, %v1382_v50 }
 0x20b   :  { %1037 = verf.f32 %v743_v12  ;;  %v744_v18 = vmul.f32 0.70710677, %v1390_v13  ;;  %v800_v23 = vpack.c.bf16 %v786_v10, %v785_v15  ;;  %v727_v63 = vmul.f32 0.5, %v1384_v2 }
 0x20c   :  { %v1028_v21 = vpop.eup %1027  ;;  %1039 = verf.f32 %v746_v16  ;;  %v799_v27 = vpack.c.bf16 %v784_v20, %v783_v19  ;;  %v728_v3 = vmul.f32 0.5, %v1390_v13 }
 0x20d   :  { %v1030_v53 = vpop.eup %1029  ;;  %v773_v25 = vadd.f32 1.0, %v1028_v21  ;;  %1041 = verf.f32 %v744_v18  ;;  %v934_v26 = vpop.f32.mrb[12].mxu0 }
 0x20e   :  { %v1032_v28 = vpop.eup %1031  ;;  %v771_v29 = vadd.f32 1.0, %v1030_v53  ;;  %v713_v30 = vadd.f32 %v934_v26, %v567_v24  ;;  %v704_v31 = vpop.f32.mrb[13].mxu0  ;;  %937 = vmatpush3.bf16.msra.mxu1 %v799_v27 }
 0x20f   :  { %v1034_v47 = vpop.eup %1033  ;;  %v774_v33 = vadd.f32 1.0, %v1032_v28  ;;  %v705_v34 = vadd.f32 %v704_v31, %v557_v0  ;;  %v935_v35 = vpop.f32.mrb[14].mxu0  ;;  %938 = vmatprep.subr.bf16.mxu1 %v1077_v17  ;;  %v789_v56 = vmul.f32 %v773_v25, %v725_v22  ;;  %v730_v0 = vmul.f32 0.5, %v1387_v7  ;;  %v807_v28 = vld [vmem:[%s1426_s5] sm:$0xf] }
 0x210   :  { %v772_v40 = vadd.f32 1.0, %v1034_v47  ;;  %v749_v42 = vmul.f32 0.70710677, %v713_v30  ;;  %v707_v43 = vpop.f32.mrb[15].mxu0  ;;  %v716_v51 = vadd.f32 %v935_v35, %v572_v36  ;;  %v787_v52 = vmul.f32 %v771_v29, %v723_v37  ;;  %v812_v29 = vpop.permute.xlu0 %811 }
 0x211   :  { %v790_v46 = vmul.f32 %v774_v33, %v726_v32  ;;  %v747_v48 = vmul.f32 0.70710677, %v705_v34  ;;  %v708_v44 = vadd.f32 %v707_v43, %v562_v14  ;;  %v733_v13 = vmul.f32 0.5, %v713_v30 }
 0x212   :  { %v788_v39 = vmul.f32 %v772_v40, %v724_v38  ;;  %1043 = verf.f32 %v749_v42  ;;  %v750_v54 = vmul.f32 0.70710677, %v716_v51  ;;  %939 = vmatpush3.bf16.msra.mxu1 %v800_v23  ;;  %v734_v16 = vmul.f32 0.5, %v716_v51 }
 0x213   :  { %1045 = verf.f32 %v747_v48  ;;  %v802_v55 = vpack.c.bf16 %v790_v46, %v789_v56  ;;  %v748_v41 = vmul.f32 0.70710677, %v708_v44  ;;  %940 = vmatprep.subr.bf16.mxu1 %v1077_v17  ;;  %v731_v19 = vmul.f32 0.5, %v705_v34 }
 0x214   :  { %v1036_v59 = vpop.eup %1035  ;;  %v801_v49 = vpack.c.bf16 %v788_v39, %v787_v52  ;;  %1047 = verf.f32 %v750_v54  ;;  %v732_v20 = vmul.f32 0.5, %v708_v44 }
 0x215   :  { %v1038_v57 = vpop.eup %1037  ;;  %v777_v45 = vadd.f32 1.0, %v1036_v59  ;;  %1049 = verf.f32 %v748_v41 }
 0x216   :  { %v1040_v60 = vpop.eup %1039  ;;  %v775_v61 = vadd.f32 1.0, %v1038_v57  ;;  %941 = vmatpush3.bf16.msra.mxu1 %v801_v49 }
 0x217   :  { %v1042_v58 = vpop.eup %1041  ;;  %v778_v1 = vadd.f32 1.0, %v1040_v60  ;;  %942 = vmatprep.subr.bf16.mxu1 %v1077_v17  ;;  %v793_v5 = vmul.f32 %v777_v45, %v729_v62 }
 0x218   :  { %v776_v4 = vadd.f32 1.0, %v1042_v58  ;;  %v791_v8 = vmul.f32 %v775_v61, %v727_v63 }
 0x219   :  { %v794_v6 = vmul.f32 %v778_v1, %v730_v0 }
 0x21a   :  { %v792_v9 = vmul.f32 %v776_v4, %v728_v3  ;;  %943 = vmatpush3.bf16.msra.mxu1 %v802_v55 }
 0x21b   :  { %v804_v10 = vpack.c.bf16 %v794_v6, %v793_v5  ;;  %944 = vmatprep.subr.bf16.mxu1 %v1077_v17 }
 0x21c   :  { %v1044_v11 = vpop.eup %1043  ;;  %v803_v50 = vpack.c.bf16 %v792_v9, %v791_v8 }
 0x21d   :  { %v1046_v7 = vpop.eup %1045  ;;  %v781_v12 = vadd.f32 1.0, %v1044_v11 }
 0x21e   :  { %v1048_v14 = vpop.eup %1047  ;;  %v779_v15 = vadd.f32 1.0, %v1046_v7  ;;  %945 = vmatpush3.bf16.msra.mxu1 %v803_v50 }
 0x21f   :  { %v1050_v2 = vpop.eup %1049  ;;  %v782_v18 = vadd.f32 1.0, %v1048_v14  ;;  %946 = vmatprep.subr.bf16.mxu1 %v1077_v17  ;;  %v797_v23 = vmul.f32 %v781_v12, %v733_v13 }
 0x220   :  { %v780_v21 = vadd.f32 1.0, %v1050_v2  ;;  %v795_v24 = vmul.f32 %v779_v15, %v731_v19 }
 0x221   :  { %v798_v53 = vmul.f32 %v782_v18, %v734_v16 }
 0x222   :  { %v796_v25 = vmul.f32 %v780_v21, %v732_v20  ;;  %947 = vmatpush3.bf16.msra.mxu1 %v804_v10 }
 0x223   :  { %948 = vmatprep.subr.bf16.mxu1 %v1077_v17  ;;  %v806_v26 = vpack.c.bf16 %v798_v53, %v797_v23 }
 0x224   :  { %v805_v27 = vpack.c.bf16 %v796_v25, %v795_v24 }
 0x226   :  { %949 = vmatpush3.bf16.msra.mxu1 %v805_v27 }
 0x227   :  { %950 = vmatprep.subr.bf16.mxu1 %v1077_v17 }
 0x22a   :  { %951 = vmatpush3.bf16.msra.mxu1 %v806_v26 }
 0x22d   :  { %953 = vmatmul.mubr.bf16.vlgmr.msra.gmra.mrb[0].mxu1 %v807_v28 }
 0x300   :  { %v848_v30 = vpop.f32.mrb[0].mxu1 }
 0x301   :  { %v849_v31 = vadd.f32 %v848_v30, %v812_v29  ;;  %v954_v47 = vpop.f32.mrb[1].mxu1 }
 0x302   :  { %v851_v22 = vpop.f32.mrb[2].mxu1 }
 0x303   :  { %854 = vst [vmem:[#allocation2] sm:$0xff] %v849_v31  ;;  %v955_v32 = vpop.f32.mrb[3].mxu1 }
 0x304   :  { %1062 = shalt.err (!%p1059_p4)
}
 0x305   :  { %s1063_s24 = scalar_lea.hbm %s1428_s7, 128 }
 0x306   :  { %p1064_p5 = scmp.ne.s32.totalorder %s1428_s7, %s1063_s24  ;;  %p1067_p6 = scmp.lt.u32.totalorder %s1063_s24, %s1428_s7 }
 0x308   :  { %p1069_p7 = pnand %p1067_p6, %p1064_p5 }
 0x30a   :  { %1072 = shalt.err (!%p1069_p7)
}
 0x30b   :  { %864 = dma.vmem_to_hbm [thread:$0]  %s862_s21, 128, %s1428_s7, [#allocation3]  }
 0x30c   :  { %1073 = dma.done.wait [#allocation3], 128  }
 0x30d   :  { %1074 = vsyncadd [#allocation3], 4294967168 }
 0x30e   :  { %868 = vsyncpa [#allocation3], 1 }

</bundles_post_ra>
